<compile_context>
chip_gen: v5e
topology: v5e:2x2
jax: 0.10.0
libtpu: 0.0.40
codegen_flags: <defaults>
</compile_context>

<pallas_src>
import jax
import jax.numpy as jnp
from jax.experimental import pallas as pl
from jax.experimental.pallas import tpu as pltpu


def _leaky_relu(h, slope=0.2):
    return jnp.where(h > 0, h, slope * h)


def _round_up(n, m):
    return ((n + m - 1) // m) * m


def autoencoder_kernel(
    x_ref,
    w1_ref, b1_ref,       # encoder L1: I  -> 64
    w2_ref, b2_ref,       # encoder L2: 64 -> 32
    w34_ref, b34_ref,     # fused enc L3 + dec L1: 32 -> 32 (no activation between)
    w5_ref, b5_ref,       # decoder L2: 32 -> 64
    w6_ref, b6_ref,       # decoder L3: 64 -> I
    o_ref,
):
    cdt = w1_ref.dtype    # MXU-input compute dtype (bf16 by default)

    x = x_ref[...]        # already cast to compute dtype in the wrapper
    h = jnp.dot(x, w1_ref[...], preferred_element_type=jnp.float32) + b1_ref[...]
    h = _leaky_relu(h).astype(cdt)
    # Dropout(0.2) -> identity at inference.
    h = jnp.dot(h, w2_ref[...], preferred_element_type=jnp.float32) + b2_ref[...]
    h = _leaky_relu(h).astype(cdt)
    # Dropout(0.2) -> identity at inference.
    # Fused bottleneck:  z = h@w3+b3 ; d = z@w4+b4  ==  h@(w3@w4) + (b3@w4 + b4)
    d = jnp.dot(h, w34_ref[...], preferred_element_type=jnp.float32) + b34_ref[...]
    d = _leaky_relu(d).astype(cdt)
    d = jnp.dot(d, w5_ref[...], preferred_element_type=jnp.float32) + b5_ref[...]
    d = _leaky_relu(d).astype(cdt)
    out = jnp.dot(d, w6_ref[...], preferred_element_type=jnp.float32) + b6_ref[...]
    o_ref[...] = out.astype(o_ref.dtype)


def fuse_and_cast_params(params, compute_dtype=jnp.bfloat16):
    """Fuse enc-L3/dec-L1 (activation-free pair) and cast weights for the MXU."""
    w1, b1, w2, b2, w3, b3, w4, b4, w5, b5, w6, b6 = params
    w34 = jnp.dot(w3, w4, preferred_element_type=jnp.float32)          # (32,16)@(16,32)
    b34 = jnp.dot(b3, w4, preferred_element_type=jnp.float32) + b4     # (1,32)
    ws = [w1, w2, w34, w5, w6]
    bs = [b1, b2, b34, b5, b6]
    flat = []
    for w, b in zip(ws, bs):
        flat += [w.astype(compute_dtype),           # bf16 MXU inputs
                 b.astype(jnp.float32)]             # biases added post f32 accumulation
    return flat


def advanced_autoencoder(x, params, *, tile_rows=1024,
                         compute_dtype=jnp.bfloat16,
                         vmem_limit_bytes=32 * 1024 * 1024):
    """x: (B, input_size) float32.  params: flat list [w1,b1,...,w6,b6] (f32)."""
    B, input_size = x.shape
    out_dtype = x.dtype

    fused = fuse_and_cast_params(params, compute_dtype)

    # ---- batch tiling (grid over batch rows) ----
    tb = tile_rows
    if B <= tb:
        tb = max(8, _round_up(B, 8))          # single tile, sublane-aligned
    b_pad = _round_up(B, tb)
    if b_pad != B:
        x = jnp.pad(x, ((0, b_pad - B), (0, 0)))
    x = x.astype(compute_dtype)               # halve the streamed x HBM traffic
    grid = (b_pad // tb,)

    # x / out stream one batch tile at a time (auto double-buffered); all
    # weight/bias operands are full-extent blocks, VMEM-resident across the grid.
    x_spec = pl.BlockSpec((tb, input_size), lambda i: (i, 0))
    out_spec = pl.BlockSpec((tb, input_size), lambda i: (i, 0))
    w_specs = [pl.BlockSpec(p.shape, lambda i: (0, 0)) for p in fused]

    dims = [(input_size, 64), (64, 32), (32, 32), (32, 64), (64, input_size)]
    flops = 2 * b_pad * sum(fi * fo for fi, fo in dims)
    bytes_accessed = (x.size * x.dtype.itemsize
                      + b_pad * input_size * jnp.dtype(out_dtype).itemsize
                      + sum(int(p.size) * p.dtype.itemsize for p in fused))

    out = pl.pallas_call(
        autoencoder_kernel,
        out_shape=jax.ShapeDtypeStruct((b_pad, input_size), out_dtype),
        grid_spec=pltpu.PrefetchScalarGridSpec(
            num_scalar_prefetch=0,
            grid=grid,
            in_specs=[x_spec] + w_specs,
            out_specs=out_spec,
        ),
        compiler_params=pltpu.CompilerParams(
            dimension_semantics=("parallel",),
            vmem_limit_bytes=vmem_limit_bytes,
        ),
        cost_estimate=pl.CostEstimate(
            flops=flops, transcendentals=0, bytes_accessed=bytes_accessed),
    )(x, *fused)

    return out[:B] if b_pad != B else out


def init_params(key, input_size, hidden_size=64, bottleneck_size=16):
    """Deterministic synthetic params. Weights stored as (in, out); bias as (1, out)."""
    dims = [
        (input_size, hidden_size),            # enc L1
        (hidden_size, hidden_size // 2),      # enc L2
        (hidden_size // 2, bottleneck_size),  # enc L3
        (bottleneck_size, hidden_size // 2),  # dec L1
        (hidden_size // 2, hidden_size),      # dec L2
        (hidden_size, input_size),            # dec L3
    ]
    params = []
    for (fan_in, fan_out) in dims:
        key, kw, kb = jax.random.split(key, 3)
        bound = 1.0 / jnp.sqrt(fan_in)
        w = jax.random.uniform(kw, (fan_in, fan_out), jnp.float32, -bound, bound)
        b = jax.random.uniform(kb, (1, fan_out), jnp.float32, -bound, bound)
        params += [w, b]
    return params


def reference_forward_f32(x, params):
    """Pure-JAX f32 reference matching the PyTorch module (eval mode)."""
    w1, b1, w2, b2, w3, b3, w4, b4, w5, b5, w6, b6 = params
    h = _leaky_relu(x @ w1 + b1)
    h = _leaky_relu(h @ w2 + b2)
    z = h @ w3 + b3
    d = _leaky_relu(z @ w4 + b4)
    d = _leaky_relu(d @ w5 + b5)
    return d @ w6 + b6


def reference_forward_fused_bf16(x, params, compute_dtype=jnp.bfloat16):
    """Pure-JAX reference using the exact fused/bf16 compute recipe of the kernel."""
    w1, b1, w2, b2, w34, b34, w5, b5, w6, b6 = fuse_and_cast_params(params, compute_dtype)
    h = x.astype(compute_dtype)
    h = _leaky_relu(jnp.dot(h, w1, preferred_element_type=jnp.float32) + b1).astype(compute_dtype)
    h = _leaky_relu(jnp.dot(h, w2, preferred_element_type=jnp.float32) + b2).astype(compute_dtype)
    d = _leaky_relu(jnp.dot(h, w34, preferred_element_type=jnp.float32) + b34).astype(compute_dtype)
    d = _leaky_relu(jnp.dot(d, w5, preferred_element_type=jnp.float32) + b5).astype(compute_dtype)
    return jnp.dot(d, w6, preferred_element_type=jnp.float32) + b6


if __name__ == "__main__":
    key = jax.random.PRNGKey(0)
    batch, input_size = 8, 32

    key, kx = jax.random.split(key)
    x = jax.random.normal(kx, (batch, input_size), jnp.float32)
    params = init_params(key, input_size)

    out = advanced_autoencoder(x, params)
    out = jax.block_until_ready(out)

    assert out.shape == (batch, input_size)
    assert out.dtype == jnp.float32

    # Exact-recipe reference (fused bottleneck, bf16 MXU inputs, f32 accumulation).
    ref_recipe = reference_forward_fused_bf16(x, params)
    assert jnp.allclose(out, ref_recipe, atol=2e-3, rtol=2e-3), "mismatch vs fused-bf16 reference"

    # PyTorch-equivalent f32 reference (relaxed tolerance covers bf16 MXU inputs).
    ref_f32 = reference_forward_f32(x, params)
    assert jnp.allclose(out, ref_f32, atol=5e-2, rtol=5e-2), "mismatch vs f32 reference"

    print("KERNEL_OK")
</pallas_src>

<mosaic_0001>
module attributes {stable_mosaic.version = 11 : i64} {
  func.func @autoencoder_kernel(%arg0: i32, %arg1: memref<8x32xbf16, #tpu.memory_space<vmem>>, %arg2: memref<32x64xbf16, #tpu.memory_space<vmem>>, %arg3: memref<1x64xf32, #tpu.memory_space<vmem>>, %arg4: memref<64x32xbf16, #tpu.memory_space<vmem>>, %arg5: memref<1x32xf32, #tpu.memory_space<vmem>>, %arg6: memref<32x32xbf16, #tpu.memory_space<vmem>>, %arg7: memref<1x32xf32, #tpu.memory_space<vmem>>, %arg8: memref<32x64xbf16, #tpu.memory_space<vmem>>, %arg9: memref<1x64xf32, #tpu.memory_space<vmem>>, %arg10: memref<64x32xbf16, #tpu.memory_space<vmem>>, %arg11: memref<1x32xf32, #tpu.memory_space<vmem>>, %arg12: memref<8x32xf32, #tpu.memory_space<vmem>>) attributes {dimension_semantics = [#tpu.dimension_semantics<parallel>], iteration_bounds = array<i64: 1>, scalar_prefetch = 0 : i64, scratch_operands = 0 : i64, tpu.core_type = #tpu.core_type<tc>, window_params = [{transform_indices = @transform_0, window_bounds = array<i64: 8, 32>}, {pipeline_mode = #tpu.pipeline_mode<synchronous>, transform_indices = @transform_1, window_bounds = array<i64: 32, 64>}, {pipeline_mode = #tpu.pipeline_mode<synchronous>, transform_indices = @transform_2, window_bounds = array<i64: 1, 64>}, {pipeline_mode = #tpu.pipeline_mode<synchronous>, transform_indices = @transform_3, window_bounds = array<i64: 64, 32>}, {pipeline_mode = #tpu.pipeline_mode<synchronous>, transform_indices = @transform_4, window_bounds = array<i64: 1, 32>}, {pipeline_mode = #tpu.pipeline_mode<synchronous>, transform_indices = @transform_5, window_bounds = array<i64: 32, 32>}, {pipeline_mode = #tpu.pipeline_mode<synchronous>, transform_indices = @transform_6, window_bounds = array<i64: 1, 32>}, {pipeline_mode = #tpu.pipeline_mode<synchronous>, transform_indices = @transform_7, window_bounds = array<i64: 32, 64>}, {pipeline_mode = #tpu.pipeline_mode<synchronous>, transform_indices = @transform_8, window_bounds = array<i64: 1, 64>}, {pipeline_mode = #tpu.pipeline_mode<synchronous>, transform_indices = @transform_9, window_bounds = array<i64: 64, 32>}, {pipeline_mode = #tpu.pipeline_mode<synchronous>, transform_indices = @transform_10, window_bounds = array<i64: 1, 32>}, {transform_indices = @transform_11, window_bounds = array<i64: 8, 32>}]} {
    %c0 = arith.constant 0 : index
    %c0_0 = arith.constant 0 : index
    %0 = vector.load %arg1[%c0, %c0_0] : memref<8x32xbf16, #tpu.memory_space<vmem>>, vector<8x32xbf16>
    %c0_1 = arith.constant 0 : index
    %c0_2 = arith.constant 0 : index
    %1 = vector.load %arg2[%c0_1, %c0_2] : memref<32x64xbf16, #tpu.memory_space<vmem>>, vector<32x64xbf16>
    %cst = arith.constant dense<0.000000e+00> : vector<8x64xf32>
    %2 = tpu.matmul %0, %1, %cst {dimension_numbers = #tpu.dot_dimension_numbers<[1], [0], [0], [1], [0, 0, 1, 1], [], []>} : vector<8x32xbf16>, vector<32x64xbf16>, vector<8x64xf32> -> vector<8x64xf32>
    %c0_3 = arith.constant 0 : index
    %c0_4 = arith.constant 0 : index
    %3 = vector.load %arg3[%c0_3, %c0_4] : memref<1x64xf32, #tpu.memory_space<vmem>>, vector<1x64xf32>
    %4 = vector.broadcast %3 : vector<1x64xf32> to vector<8x64xf32>
    %5 = arith.addf %2, %4 : vector<8x64xf32>
    %cst_5 = arith.constant 0.000000e+00 : f32
    %6 = vector.broadcast %cst_5 : f32 to vector<8x64xf32>
    %7 = arith.cmpf ogt, %5, %6 : vector<8x64xf32>
    %cst_6 = arith.constant 2.000000e-01 : f32
    %8 = vector.broadcast %cst_6 : f32 to vector<8x64xf32>
    %9 = arith.mulf %8, %5 : vector<8x64xf32>
    %10 = arith.select %7, %5, %9 : vector<8x64xi1>, vector<8x64xf32>
    %11 = arith.truncf %10 : vector<8x64xf32> to vector<8x64xbf16>
    %c0_7 = arith.constant 0 : index
    %c0_8 = arith.constant 0 : index
    %12 = vector.load %arg4[%c0_7, %c0_8] : memref<64x32xbf16, #tpu.memory_space<vmem>>, vector<64x32xbf16>
    %cst_9 = arith.constant dense<0.000000e+00> : vector<8x32xf32>
    %13 = tpu.matmul %11, %12, %cst_9 {dimension_numbers = #tpu.dot_dimension_numbers<[1], [0], [0], [1], [0, 0, 1, 1], [], []>} : vector<8x64xbf16>, vector<64x32xbf16>, vector<8x32xf32> -> vector<8x32xf32>
    %c0_10 = arith.constant 0 : index
    %c0_11 = arith.constant 0 : index
    %14 = vector.load %arg5[%c0_10, %c0_11] : memref<1x32xf32, #tpu.memory_space<vmem>>, vector<1x32xf32>
    %15 = vector.broadcast %14 : vector<1x32xf32> to vector<8x32xf32>
    %16 = arith.addf %13, %15 : vector<8x32xf32>
    %cst_12 = arith.constant 0.000000e+00 : f32
    %17 = vector.broadcast %cst_12 : f32 to vector<8x32xf32>
    %18 = arith.cmpf ogt, %16, %17 : vector<8x32xf32>
    %cst_13 = arith.constant 2.000000e-01 : f32
    %19 = vector.broadcast %cst_13 : f32 to vector<8x32xf32>
    %20 = arith.mulf %19, %16 : vector<8x32xf32>
    %21 = arith.select %18, %16, %20 : vector<8x32xi1>, vector<8x32xf32>
    %22 = arith.truncf %21 : vector<8x32xf32> to vector<8x32xbf16>
    %c0_14 = arith.constant 0 : index
    %c0_15 = arith.constant 0 : index
    %23 = vector.load %arg6[%c0_14, %c0_15] : memref<32x32xbf16, #tpu.memory_space<vmem>>, vector<32x32xbf16>
    %cst_16 = arith.constant dense<0.000000e+00> : vector<8x32xf32>
    %24 = tpu.matmul %22, %23, %cst_16 {dimension_numbers = #tpu.dot_dimension_numbers<[1], [0], [0], [1], [0, 0, 1, 1], [], []>} : vector<8x32xbf16>, vector<32x32xbf16>, vector<8x32xf32> -> vector<8x32xf32>
    %c0_17 = arith.constant 0 : index
    %c0_18 = arith.constant 0 : index
    %25 = vector.load %arg7[%c0_17, %c0_18] : memref<1x32xf32, #tpu.memory_space<vmem>>, vector<1x32xf32>
    %26 = vector.broadcast %25 : vector<1x32xf32> to vector<8x32xf32>
    %27 = arith.addf %24, %26 : vector<8x32xf32>
    %cst_19 = arith.constant 0.000000e+00 : f32
    %28 = vector.broadcast %cst_19 : f32 to vector<8x32xf32>
    %29 = arith.cmpf ogt, %27, %28 : vector<8x32xf32>
    %cst_20 = arith.constant 2.000000e-01 : f32
    %30 = vector.broadcast %cst_20 : f32 to vector<8x32xf32>
    %31 = arith.mulf %30, %27 : vector<8x32xf32>
    %32 = arith.select %29, %27, %31 : vector<8x32xi1>, vector<8x32xf32>
    %33 = arith.truncf %32 : vector<8x32xf32> to vector<8x32xbf16>
    %c0_21 = arith.constant 0 : index
    %c0_22 = arith.constant 0 : index
    %34 = vector.load %arg8[%c0_21, %c0_22] : memref<32x64xbf16, #tpu.memory_space<vmem>>, vector<32x64xbf16>
    %cst_23 = arith.constant dense<0.000000e+00> : vector<8x64xf32>
    %35 = tpu.matmul %33, %34, %cst_23 {dimension_numbers = #tpu.dot_dimension_numbers<[1], [0], [0], [1], [0, 0, 1, 1], [], []>} : vector<8x32xbf16>, vector<32x64xbf16>, vector<8x64xf32> -> vector<8x64xf32>
    %c0_24 = arith.constant 0 : index
    %c0_25 = arith.constant 0 : index
    %36 = vector.load %arg9[%c0_24, %c0_25] : memref<1x64xf32, #tpu.memory_space<vmem>>, vector<1x64xf32>
    %37 = vector.broadcast %36 : vector<1x64xf32> to vector<8x64xf32>
    %38 = arith.addf %35, %37 : vector<8x64xf32>
    %cst_26 = arith.constant 0.000000e+00 : f32
    %39 = vector.broadcast %cst_26 : f32 to vector<8x64xf32>
    %40 = arith.cmpf ogt, %38, %39 : vector<8x64xf32>
    %cst_27 = arith.constant 2.000000e-01 : f32
    %41 = vector.broadcast %cst_27 : f32 to vector<8x64xf32>
    %42 = arith.mulf %41, %38 : vector<8x64xf32>
    %43 = arith.select %40, %38, %42 : vector<8x64xi1>, vector<8x64xf32>
    %44 = arith.truncf %43 : vector<8x64xf32> to vector<8x64xbf16>
    %c0_28 = arith.constant 0 : index
    %c0_29 = arith.constant 0 : index
    %45 = vector.load %arg10[%c0_28, %c0_29] : memref<64x32xbf16, #tpu.memory_space<vmem>>, vector<64x32xbf16>
    %cst_30 = arith.constant dense<0.000000e+00> : vector<8x32xf32>
    %46 = tpu.matmul %44, %45, %cst_30 {dimension_numbers = #tpu.dot_dimension_numbers<[1], [0], [0], [1], [0, 0, 1, 1], [], []>} : vector<8x64xbf16>, vector<64x32xbf16>, vector<8x32xf32> -> vector<8x32xf32>
    %c0_31 = arith.constant 0 : index
    %c0_32 = arith.constant 0 : index
    %47 = vector.load %arg11[%c0_31, %c0_32] : memref<1x32xf32, #tpu.memory_space<vmem>>, vector<1x32xf32>
    %48 = vector.broadcast %47 : vector<1x32xf32> to vector<8x32xf32>
    %49 = arith.addf %46, %48 : vector<8x32xf32>
    %c0_33 = arith.constant 0 : index
    %c0_34 = arith.constant 0 : index
    %50 = vector.load %arg12[%c0_33, %c0_34] : memref<8x32xf32, #tpu.memory_space<vmem>>, vector<8x32xf32>
    tpu.vector_store %arg12[%c0_33, %c0_34], %49 {strides = array<i32>} : memref<8x32xf32, #tpu.memory_space<vmem>>, vector<8x32xf32>,
    return
  }
  func.func @transform_0(%arg0: i32) -> (i32, i32) {
    %c0_i32 = arith.constant 0 : i32
    %c0_i32_0 = arith.constant 0 : i32
    return %arg0, %c0_i32 : i32, i32
  }
  func.func @transform_1(%arg0: i32) -> (i32, i32) {
    %c0_i32 = arith.constant 0 : i32
    %c0_i32_0 = arith.constant 0 : i32
    %c0_i32_1 = arith.constant 0 : i32
    return %c0_i32, %c0_i32_0 : i32, i32
  }
  func.func @transform_2(%arg0: i32) -> (i32, i32) {
    %c0_i32 = arith.constant 0 : i32
    %c0_i32_0 = arith.constant 0 : i32
    %c0_i32_1 = arith.constant 0 : i32
    return %c0_i32, %c0_i32_0 : i32, i32
  }
  func.func @transform_3(%arg0: i32) -> (i32, i32) {
    %c0_i32 = arith.constant 0 : i32
    %c0_i32_0 = arith.constant 0 : i32
    %c0_i32_1 = arith.constant 0 : i32
    return %c0_i32, %c0_i32_0 : i32, i32
  }
  func.func @transform_4(%arg0: i32) -> (i32, i32) {
    %c0_i32 = arith.constant 0 : i32
    %c0_i32_0 = arith.constant 0 : i32
    %c0_i32_1 = arith.constant 0 : i32
    return %c0_i32, %c0_i32_0 : i32, i32
  }
  func.func @transform_5(%arg0: i32) -> (i32, i32) {
    %c0_i32 = arith.constant 0 : i32
    %c0_i32_0 = arith.constant 0 : i32
    %c0_i32_1 = arith.constant 0 : i32
    return %c0_i32, %c0_i32_0 : i32, i32
  }
  func.func @transform_6(%arg0: i32) -> (i32, i32) {
    %c0_i32 = arith.constant 0 : i32
    %c0_i32_0 = arith.constant 0 : i32
    %c0_i32_1 = arith.constant 0 : i32
    return %c0_i32, %c0_i32_0 : i32, i32
  }
  func.func @transform_7(%arg0: i32) -> (i32, i32) {
    %c0_i32 = arith.constant 0 : i32
    %c0_i32_0 = arith.constant 0 : i32
    %c0_i32_1 = arith.constant 0 : i32
    return %c0_i32, %c0_i32_0 : i32, i32
  }
  func.func @transform_8(%arg0: i32) -> (i32, i32) {
    %c0_i32 = arith.constant 0 : i32
    %c0_i32_0 = arith.constant 0 : i32
    %c0_i32_1 = arith.constant 0 : i32
    return %c0_i32, %c0_i32_0 : i32, i32
  }
  func.func @transform_9(%arg0: i32) -> (i32, i32) {
    %c0_i32 = arith.constant 0 : i32
    %c0_i32_0 = arith.constant 0 : i32
    %c0_i32_1 = arith.constant 0 : i32
    return %c0_i32, %c0_i32_0 : i32, i32
  }
  func.func @transform_10(%arg0: i32) -> (i32, i32) {
    %c0_i32 = arith.constant 0 : i32
    %c0_i32_0 = arith.constant 0 : i32
    %c0_i32_1 = arith.constant 0 : i32
    return %c0_i32, %c0_i32_0 : i32, i32
  }
  func.func @transform_11(%arg0: i32) -> (i32, i32) {
    %c0_i32 = arith.constant 0 : i32
    %c0_i32_0 = arith.constant 0 : i32
    return %arg0, %c0_i32 : i32, i32
  }
}

</mosaic_0001>

<bundles_post_ra>
// kernel: tpu_custom_call.1
= control target key start
LH: loop header
LB: loop body
LE: loop exit
PB: predicated region body
PF: predicated region fallthrough
CT: control target
= control target key end

     0   :  { %s525_s0 = inlined_call_operand.vmem [shape: bf16[8,32], index: 0, kind: input, shape index: {}]   ;;  %s526_s1 = inlined_call_operand.vmem [shape: bf16[32,64], index: 1, kind: input, shape index: {}]   ;;  %s527_s2 = inlined_call_operand.vmem [shape: f32[1,64], index: 2, kind: input, shape index: {}]   ;;  %s528_s3 = inlined_call_operand.vmem [shape: bf16[64,32], index: 3, kind: input, shape index: {}]   ;;  %s529_s4 = inlined_call_operand.vmem [shape: f32[1,32], index: 4, kind: input, shape index: {}]   ;;  %s530_s5 = inlined_call_operand.vmem [shape: bf16[32,32], index: 5, kind: input, shape index: {}]   ;;  %s531_s6 = inlined_call_operand.vmem [shape: f32[1,32], index: 6, kind: input, shape index: {}]   ;;  %s532_s7 = inlined_call_operand.vmem [shape: bf16[32,64], index: 7, kind: input, shape index: {}]   ;;  %s533_s8 = inlined_call_operand.vmem [shape: f32[1,64], index: 8, kind: input, shape index: {}]   ;;  %s534_s9 = inlined_call_operand.vmem [shape: bf16[64,32], index: 9, kind: input, shape index: {}]   ;;  %s535_s10 = inlined_call_operand.vmem [shape: f32[1,32], index: 10, kind: input, shape index: {}]   ;;  %s536_s11 = inlined_call_operand.hbm [shape: f32[8,32], index: 11, kind: output, shape index: {}]  }
   0x1   :  { %v350_v0 = vld [vmem:[%s526_s1 + $0x8] sm:$0xff]  ;;  %v349_v1 = vld [vmem:[%s526_s1] sm:$0xff]  ;;  %v354_v2 = vld [vmem:[%s528_s3 + $0x18] sm:$0xff] }
   0x2   :  { %71 = vmatpush.bf16.msra.mxu0 %v350_v0  ;;  %v353_v3 = vld [vmem:[%s528_s3 + $0x10] sm:$0xff]  ;;  %126 = vmatpush.bf16.msra.mxu1 %v354_v2 }
   0x3   :  { %16 = vsyncpa [#allocation3], 0  ;;  %v40_v4 = vld [vmem:[%s525_s0] sm:$0xf]  ;;  %vm61_vm0 = vcmask 261120   ;;  %v352_v5 = vld [vmem:[%s528_s3 + $0x8] sm:$0xff] }
   0x4   :  { %v351_v6 = vld [vmem:[%s528_s3] sm:$0xff]  ;;  %vm118_vm2 = vcmask 523264   ;;  %v356_v14 = vld [vmem:[%s530_s5 + $0x8] sm:$0xff]  ;;  %v362_v25 = vld [vmem:[%s534_s9 + $0x18] sm:$0xff]  ;;  %s395_s29 = smov [#allocation2]   ;;  %s279_s0 = sshll.u32 %s536_s11, 4  ;;  %s280_s0 = int_to_ptr.hbm [resolvable:$true] %s279_s0 }
   0x5   :  { %v364_v7 = vld [vmem:[%s527_s2] ss:$0 sm:$0xff]  ;;  %168 = vmatpush.bf16.msra.mxu2 %v356_v14  ;;  %v358_v23 = vld [vmem:[%s532_s7 + $0x8] sm:$0xff]  ;;  %v361_v26 = vld [vmem:[%s534_s9 + $0x10] sm:$0xff] }
   0x6   :  { %72 = vmatpush.bf16.msra.mxu0 %v349_v1  ;;  %127 = vmatpush.bf16.msra.mxu1 %v353_v3  ;;  %v355_v15 = vld [vmem:[%s530_s5] sm:$0xff]  ;;  %v360_v34 = vld [vmem:[%s534_s9 + $0x8] sm:$0xff] }
   0x7   :  { %v365_v16 = vld [vmem:[%s529_s4] ss:$0 sm:$0xff]  ;;  %208 = vmatpush.bf16.msra.mxu3 %v358_v23 }
   0x8   :  { %v357_v24 = vld [vmem:[%s532_s7] sm:$0xff] }
   0x9   :  { %296 = vmatmul.msk.bf16.vlgmr.msra.gmra.mxu0 %vm61_vm0, %v40_v4  ;;  %169 = vmatpush.bf16.msra.mxu2 %v355_v15  ;;  %v366_v27 = vld [vmem:[%s531_s6] ss:$0 sm:$0xff] }
   0xa   :  { %128 = vmatpush.bf16.msra.mxu1 %v352_v5  ;;  %262 = vmatpush.bf16.msrb.mxu0 %v362_v25  ;;  %v359_v35 = vld [vmem:[%s534_s9] sm:$0xff]  ;;  %s277_s9 = sshll.u32 %s395_s29, 4  ;;  %s278_s9 = int_to_ptr.vmem [resolvable:$true] %s277_s9 }
   0xb   :  { %209 = vmatpush.bf16.msra.mxu3 %v357_v24  ;;  %v367_v36 = vld [vmem:[%s533_s8] ss:$0 sm:$0xff] }
   0xc   :  { %v368_v43 = vld [vmem:[%s535_s10] ss:$0 sm:$0xff] }
   0xe   :  { %129 = vmatpush.bf16.msra.mxu1 %v351_v6  ;;  %263 = vmatpush.bf16.msrb.mxu0 %v361_v26 }
  0x12   :  { %264 = vmatpush.bf16.msrb.mxu0 %v360_v34 }
  0x16   :  { %265 = vmatpush.bf16.msrb.mxu0 %v359_v35 }
  0x86   :  { %v74_v8 = vpop.f32.mrf.mxu0 }
  0x87   :  { %v75_v9 = vadd.f32 %v364_v7, %v74_v8 }
  0x89   :  { %vm78_vm1 = vcmp.gt.f32.partialorder %v75_v9, 0.0  ;;  %v79_v10 = vmul.f32 0.2, %v75_v9 }
  0x8b   :  { %v80_v11 = vsel %vm78_vm1, %v75_v9, %v79_v10 }
  0x8c   :  { %v81_v12 = vpack.c.bf16 %v80_v11, %v80_v11 }
  0x8e   :  { %v76_v13 = vpop.f32.mrf.mxu0  ;;  %313 = vmatmul.msk.bf16.vlgmr.msra.gmra.mxu1 %vm118_vm2, %v81_v12 }
 0x10b   :  { %v131_v17 = vpop.f32.mrf.mxu1 }
 0x10c   :  { %v132_v18 = vadd.f32 %v365_v16, %v131_v17 }
 0x10e   :  { %vm135_vm3 = vcmp.gt.f32.partialorder %v132_v18, 0.0  ;;  %v136_v19 = vmul.f32 0.2, %v132_v18 }
 0x110   :  { %v137_v20 = vsel %vm135_vm3, %v132_v18, %v136_v19 }
 0x111   :  { %v138_v21 = vpack.c.bf16 %v137_v20, %v137_v20 }
 0x113   :  { %v133_v22 = vpop.f32.mrf.mxu1  ;;  %322 = vmatmul.msk.bf16.vlgmr.msra.gmra.mxu2 %vm61_vm0, %v138_v21 }
 0x196   :  { %v171_v28 = vpop.f32.mrf.mxu2 }
 0x197   :  { %v172_v29 = vadd.f32 %v366_v27, %v171_v28 }
 0x199   :  { %vm175_vm4 = vcmp.gt.f32.partialorder %v172_v29, 0.0  ;;  %v176_v30 = vmul.f32 0.2, %v172_v29 }
 0x19b   :  { %v177_v31 = vsel %vm175_vm4, %v172_v29, %v176_v30 }
 0x19c   :  { %v178_v32 = vpack.c.bf16 %v177_v31, %v177_v31 }
 0x19e   :  { %v173_v33 = vpop.f32.mrf.mxu2  ;;  %331 = vmatmul.msk.bf16.vlgmr.msra.gmra.mxu3 %vm61_vm0, %v178_v32 }
 0x221   :  { %v211_v37 = vpop.f32.mrf.mxu3 }
 0x222   :  { %v212_v38 = vadd.f32 %v367_v36, %v211_v37 }
 0x224   :  { %vm215_vm5 = vcmp.gt.f32.partialorder %v212_v38, 0.0  ;;  %v216_v39 = vmul.f32 0.2, %v212_v38 }
 0x226   :  { %v217_v40 = vsel %vm215_vm5, %v212_v38, %v216_v39 }
 0x227   :  { %v218_v41 = vpack.c.bf16 %v217_v40, %v217_v40 }
 0x229   :  { %v213_v42 = vpop.f32.mrf.mxu3  ;;  %348 = vmatmul.msk.bf16.vlgmr.msrb.gmra.mxu0 %vm118_vm2, %v218_v41 }
 0x2a6   :  { %v267_v44 = vpop.f32.mrf.mxu0 }
 0x2a7   :  { %v268_v45 = vadd.f32 %v368_v43, %v267_v44 }
 0x2a9   :  { %271 = vst.msk [vmem:[#allocation2] sm:$0xff] %vm61_vm0, %v268_v45 }
 0x2aa   :  { %282 = dma.vmem_to_hbm [thread:$0]  %s278_s9, 128, %s280_s0, [#allocation3]  }
 0x2ae   :  { %v269_v46 = vpop.f32.mrf.mxu0 }
 0x2af   :  { %393 = dma.done.wait [#allocation3], 128  }
 0x2b0   :  { %394 = vsyncadd [#allocation3], 4294967168 }
 0x2b1   :  { %287 = vsyncpa [#allocation3], 1 }

</bundles_post_ra>
